<compile_context>
chip_gen: v6e
topology: v6e:2x2x1
jax: 0.10.0
libtpu: 0.0.40
codegen_flags: <defaults>
</compile_context>

<pallas_src>
import functools

import jax
import jax.numpy as jnp
from jax.experimental import pallas as pl
from jax.experimental.pallas import tpu as pltpu

IN_DIM = 6
Z_DIM = 64
HIDDEN_PAD = 128          # hidden widths (100, 80, 40) zero-padded to one lane group
LAYER_DIMS = [(6, 100), (100, 80), (80, 40), (40, Z_DIM)]
NEG_SLOPE = 0.1

MAX_TB = 1024             # max batch-tile rows per grid step
MIN_GRID_STEPS = 8        # keep >=8 grid steps when batch is large enough


def _round_up(x, m):
    return ((x + m - 1) // m) * m


def _choose_tb(n):
    """Batch tile: as large as possible, multiple of 8, but keep the grid at
    >= MIN_GRID_STEPS steps once the batch is big enough."""
    n8 = _round_up(max(n, 1), 8)
    tb = min(MAX_TB, n8)
    if n8 >= MIN_GRID_STEPS * 8:
        tb = min(tb, _round_up(pl.cdiv(n8, MIN_GRID_STEPS), 8))
    return tb


def _pad_to(a, shape):
    pads = [(0, t - s) for s, t in zip(a.shape, shape)]
    return jnp.pad(a, pads) if any(p[1] for p in pads) else a


def pack_params(params, use_bf16_matmul=False):
    """Pad (and optionally pre-cast) parameters ONCE, outside the forward.

    W1: (6, 128)  W2/W3: (128, 128)  W4: (128, z_dim)   b_i: (1, out_dim).
    Zero padding is mathematically inert through bias-add + LeakyReLU
    (LeakyReLU(0) == 0).  With use_bf16_matmul, the wide hidden-layer weights
    are pre-cast to bf16 here so the kernel never re-casts resident weights
    per grid step; layer 1 (K=6, tiny) stays f32 for accuracy.
    """
    packed = []
    n_layers = len(params)
    for li, (w, b) in enumerate(params):
        in_dim = w.shape[0] if li == 0 else HIDDEN_PAD
        out_dim = w.shape[1] if li == n_layers - 1 else HIDDEN_PAD
        w_p = _pad_to(w.astype(jnp.float32), (in_dim, out_dim))
        if use_bf16_matmul and li > 0:
            w_p = w_p.astype(jnp.bfloat16)
        packed.append(w_p)
        packed.append(_pad_to(b.astype(jnp.float32)[None, :], (1, out_dim)))
    return tuple(packed)


def wrench_mlp_kernel(x_ref,
                      w1_ref, b1_ref, w2_ref, b2_ref,
                      w3_ref, b3_ref, w4_ref, b4_ref,
                      o_ref):
    """Fused 4-layer MLP on one (TB, 6) batch tile; weights resident in VMEM."""
    h = x_ref[...].astype(jnp.float32)

    def layer(h, w_ref, b_ref):
        w = w_ref[...]
        # MXU matmul in the weight's dtype (f32 or pre-packed bf16), f32 acc.
        y = jnp.dot(h.astype(w.dtype), w, preferred_element_type=jnp.float32)
        y = y + b_ref[...]                         # (TB, out) + (1, out) broadcast
        return jnp.where(y > 0, y, NEG_SLOPE * y)  # LeakyReLU(0.1)

    h = layer(h, w1_ref, b1_ref)
    h = layer(h, w2_ref, b2_ref)
    h = layer(h, w3_ref, b3_ref)
    h = layer(h, w4_ref, b4_ref)

    o_ref[...] = h.astype(o_ref.dtype)             # (TB, z_dim)


@jax.jit
def wrench_encoder_forward(x, packed_params):
    """x: (..., 6) float array. packed_params: output of pack_params()."""
    lead_shape = x.shape[:-1]
    x2 = x.reshape(-1, x.shape[-1]).astype(jnp.float32)
    n = x2.shape[0]

    tb = _choose_tb(n)
    n_pad = _round_up(n, tb)
    if n_pad != n:
        x2 = jnp.pad(x2, ((0, n_pad - n), (0, 0)))  # batch pad only (cheap)

    z_dim = packed_params[-1].shape[-1]

    # Weights/biases: whole arrays resident in VMEM for the entire grid.
    resident = pl.BlockSpec(memory_space=pltpu.MemorySpace.VMEM)

    flops = 2 * n_pad * sum(int(w.shape[0]) * int(w.shape[1])
                            for w in packed_params[0::2])
    bytes_accessed = (int(x2.size) * x2.dtype.itemsize
                      + n_pad * z_dim * 4
                      + sum(int(p.size) * p.dtype.itemsize for p in packed_params))

    out = pl.pallas_call(
        wrench_mlp_kernel,
        out_shape=jax.ShapeDtypeStruct((n_pad, z_dim), jnp.float32),
        grid_spec=pltpu.PrefetchScalarGridSpec(
            num_scalar_prefetch=0,
            grid=(n_pad // tb,),
            in_specs=[pl.BlockSpec((tb, x2.shape[1]), lambda i: (i, 0))]
                     + [resident] * len(packed_params),
            out_specs=pl.BlockSpec((tb, z_dim), lambda i: (i, 0)),
        ),
        compiler_params=pltpu.CompilerParams(
            dimension_semantics=("parallel",)),
        cost_estimate=pl.CostEstimate(
            flops=int(flops), transcendentals=0,
            bytes_accessed=int(bytes_accessed)),
    )(x2, *packed_params)

    return out[:n].reshape(*lead_shape, z_dim)


def init_params(key):
    """Deterministic synthetic init (kaiming-style fan_in scaling).
    # TODO(synk): PyTorch's external init_weights() is not defined in the spec;
    # a kaiming-style init is used here as a stand-in (forward math unchanged).
    """
    params = []
    for (fan_in, fan_out) in LAYER_DIMS:
        key, kw, kb = jax.random.split(key, 3)
        scale = jnp.sqrt(2.0 / fan_in)
        w = scale * jax.random.normal(kw, (fan_in, fan_out), dtype=jnp.float32)
        b = 0.01 * jax.random.normal(kb, (fan_out,), dtype=jnp.float32)
        params.append((w, b))
    return params


def reference_forward(x, params):
    h = x.astype(jnp.float32)
    for (w, b) in params:
        h = h @ w + b
        h = jnp.where(h > 0, h, NEG_SLOPE * h)
    return h


if __name__ == "__main__":
    key = jax.random.PRNGKey(0)
    key, kx, kx2 = jax.random.split(key, 3)

    params = init_params(key)
    packed = pack_params(params)                        # f32 pack, reused per call
    packed_bf16 = pack_params(params, use_bf16_matmul=True)

    # Small batch (grid of 1 step) -- matches the module's per-step usage.
    x_small = jax.random.normal(kx, (2, IN_DIM), dtype=jnp.float32)
    out_small = jax.block_until_ready(wrench_encoder_forward(x_small, packed))
    ref_small = reference_forward(x_small, params)
    assert out_small.shape == (2, Z_DIM), out_small.shape
    assert jnp.allclose(out_small, ref_small, atol=1e-4, rtol=1e-4), float(
        jnp.max(jnp.abs(out_small - ref_small)))

    # Single pose vector (6,) -> (z_dim,), like nn.Linear's leading-dim handling.
    out_vec = jax.block_until_ready(wrench_encoder_forward(x_small[0], packed))
    assert out_vec.shape == (Z_DIM,), out_vec.shape
    assert jnp.allclose(out_vec, ref_small[0], atol=1e-4, rtol=1e-4)

    # Larger batch: exercises multi-step grid + batch-dim padding.
    x_big = jax.random.normal(kx2, (300, IN_DIM), dtype=jnp.float32)
    out_big = jax.block_until_ready(wrench_encoder_forward(x_big, packed))
    ref_big = reference_forward(x_big, params)
    assert out_big.shape == (300, Z_DIM), out_big.shape
    assert jnp.allclose(out_big, ref_big, atol=1e-4, rtol=1e-4), float(
        jnp.max(jnp.abs(out_big - ref_big)))

    # bf16 MXU-input path (v6e/v7x): weights pre-cast at pack time, f32 acc.
    out_bf16 = jax.block_until_ready(wrench_encoder_forward(x_big, packed_bf16))
    assert jnp.allclose(out_bf16, ref_big, atol=5e-2, rtol=5e-2), float(
        jnp.max(jnp.abs(out_bf16 - ref_big)))

    print("KERNEL_OK")
</pallas_src>

<mosaic_0001>
module attributes {stable_mosaic.version = 11 : i64} {
  func.func @wrench_mlp_kernel(%arg0: i32, %arg1: memref<8x6xf32, #tpu.memory_space<vmem>>, %arg2: memref<6x128xf32, #tpu.memory_space<vmem>>, %arg3: memref<1x128xf32, #tpu.memory_space<vmem>>, %arg4: memref<128x128xf32, #tpu.memory_space<vmem>>, %arg5: memref<1x128xf32, #tpu.memory_space<vmem>>, %arg6: memref<128x128xf32, #tpu.memory_space<vmem>>, %arg7: memref<1x128xf32, #tpu.memory_space<vmem>>, %arg8: memref<128x64xf32, #tpu.memory_space<vmem>>, %arg9: memref<1x64xf32, #tpu.memory_space<vmem>>, %arg10: memref<8x64xf32, #tpu.memory_space<vmem>>) attributes {dimension_semantics = [#tpu.dimension_semantics<parallel>], iteration_bounds = array<i64: 1>, scalar_prefetch = 0 : i64, scratch_operands = 0 : i64, tpu.core_type = #tpu.core_type<tc>, window_params = [{transform_indices = @transform_0, window_bounds = array<i64: 8, 6>}, {pipeline_mode = #tpu.pipeline_mode<synchronous>, transform_indices = @transform_1, window_bounds = array<i64: 6, 128>}, {pipeline_mode = #tpu.pipeline_mode<synchronous>, transform_indices = @transform_2, window_bounds = array<i64: 1, 128>}, {pipeline_mode = #tpu.pipeline_mode<synchronous>, transform_indices = @transform_3, window_bounds = array<i64: 128, 128>}, {pipeline_mode = #tpu.pipeline_mode<synchronous>, transform_indices = @transform_4, window_bounds = array<i64: 1, 128>}, {pipeline_mode = #tpu.pipeline_mode<synchronous>, transform_indices = @transform_5, window_bounds = array<i64: 128, 128>}, {pipeline_mode = #tpu.pipeline_mode<synchronous>, transform_indices = @transform_6, window_bounds = array<i64: 1, 128>}, {pipeline_mode = #tpu.pipeline_mode<synchronous>, transform_indices = @transform_7, window_bounds = array<i64: 128, 64>}, {pipeline_mode = #tpu.pipeline_mode<synchronous>, transform_indices = @transform_8, window_bounds = array<i64: 1, 64>}, {transform_indices = @transform_9, window_bounds = array<i64: 8, 64>}]} {
    %c0 = arith.constant 0 : index
    %c0_0 = arith.constant 0 : index
    %0 = vector.load %arg1[%c0, %c0_0] : memref<8x6xf32, #tpu.memory_space<vmem>>, vector<8x6xf32>
    %c0_1 = arith.constant 0 : index
    %c0_2 = arith.constant 0 : index
    %1 = vector.load %arg2[%c0_1, %c0_2] : memref<6x128xf32, #tpu.memory_space<vmem>>, vector<6x128xf32>
    %cst = arith.constant dense<0.000000e+00> : vector<8x128xf32>
    %2 = tpu.matmul %0, %1, %cst {dimension_numbers = #tpu.dot_dimension_numbers<[1], [0], [0], [1], [0, 0, 1, 1], [], []>} : vector<8x6xf32>, vector<6x128xf32>, vector<8x128xf32> -> vector<8x128xf32>
    %c0_3 = arith.constant 0 : index
    %c0_4 = arith.constant 0 : index
    %3 = vector.load %arg3[%c0_3, %c0_4] : memref<1x128xf32, #tpu.memory_space<vmem>>, vector<1x128xf32>
    %4 = vector.broadcast %3 : vector<1x128xf32> to vector<8x128xf32>
    %5 = arith.addf %2, %4 : vector<8x128xf32>
    %cst_5 = arith.constant 0.000000e+00 : f32
    %6 = vector.broadcast %cst_5 : f32 to vector<8x128xf32>
    %7 = arith.cmpf ogt, %5, %6 : vector<8x128xf32>
    %cst_6 = arith.constant 1.000000e-01 : f32
    %8 = vector.broadcast %cst_6 : f32 to vector<8x128xf32>
    %9 = arith.mulf %8, %5 : vector<8x128xf32>
    %10 = arith.select %7, %5, %9 : vector<8x128xi1>, vector<8x128xf32>
    %c0_7 = arith.constant 0 : index
    %c0_8 = arith.constant 0 : index
    %11 = vector.load %arg4[%c0_7, %c0_8] : memref<128x128xf32, #tpu.memory_space<vmem>>, vector<128x128xf32>
    %cst_9 = arith.constant dense<0.000000e+00> : vector<8x128xf32>
    %12 = tpu.matmul %10, %11, %cst_9 {dimension_numbers = #tpu.dot_dimension_numbers<[1], [0], [0], [1], [0, 0, 1, 1], [], []>} : vector<8x128xf32>, vector<128x128xf32>, vector<8x128xf32> -> vector<8x128xf32>
    %c0_10 = arith.constant 0 : index
    %c0_11 = arith.constant 0 : index
    %13 = vector.load %arg5[%c0_10, %c0_11] : memref<1x128xf32, #tpu.memory_space<vmem>>, vector<1x128xf32>
    %14 = vector.broadcast %13 : vector<1x128xf32> to vector<8x128xf32>
    %15 = arith.addf %12, %14 : vector<8x128xf32>
    %cst_12 = arith.constant 0.000000e+00 : f32
    %16 = vector.broadcast %cst_12 : f32 to vector<8x128xf32>
    %17 = arith.cmpf ogt, %15, %16 : vector<8x128xf32>
    %cst_13 = arith.constant 1.000000e-01 : f32
    %18 = vector.broadcast %cst_13 : f32 to vector<8x128xf32>
    %19 = arith.mulf %18, %15 : vector<8x128xf32>
    %20 = arith.select %17, %15, %19 : vector<8x128xi1>, vector<8x128xf32>
    %c0_14 = arith.constant 0 : index
    %c0_15 = arith.constant 0 : index
    %21 = vector.load %arg6[%c0_14, %c0_15] : memref<128x128xf32, #tpu.memory_space<vmem>>, vector<128x128xf32>
    %cst_16 = arith.constant dense<0.000000e+00> : vector<8x128xf32>
    %22 = tpu.matmul %20, %21, %cst_16 {dimension_numbers = #tpu.dot_dimension_numbers<[1], [0], [0], [1], [0, 0, 1, 1], [], []>} : vector<8x128xf32>, vector<128x128xf32>, vector<8x128xf32> -> vector<8x128xf32>
    %c0_17 = arith.constant 0 : index
    %c0_18 = arith.constant 0 : index
    %23 = vector.load %arg7[%c0_17, %c0_18] : memref<1x128xf32, #tpu.memory_space<vmem>>, vector<1x128xf32>
    %24 = vector.broadcast %23 : vector<1x128xf32> to vector<8x128xf32>
    %25 = arith.addf %22, %24 : vector<8x128xf32>
    %cst_19 = arith.constant 0.000000e+00 : f32
    %26 = vector.broadcast %cst_19 : f32 to vector<8x128xf32>
    %27 = arith.cmpf ogt, %25, %26 : vector<8x128xf32>
    %cst_20 = arith.constant 1.000000e-01 : f32
    %28 = vector.broadcast %cst_20 : f32 to vector<8x128xf32>
    %29 = arith.mulf %28, %25 : vector<8x128xf32>
    %30 = arith.select %27, %25, %29 : vector<8x128xi1>, vector<8x128xf32>
    %c0_21 = arith.constant 0 : index
    %c0_22 = arith.constant 0 : index
    %31 = vector.load %arg8[%c0_21, %c0_22] : memref<128x64xf32, #tpu.memory_space<vmem>>, vector<128x64xf32>
    %cst_23 = arith.constant dense<0.000000e+00> : vector<8x64xf32>
    %32 = tpu.matmul %30, %31, %cst_23 {dimension_numbers = #tpu.dot_dimension_numbers<[1], [0], [0], [1], [0, 0, 1, 1], [], []>} : vector<8x128xf32>, vector<128x64xf32>, vector<8x64xf32> -> vector<8x64xf32>
    %c0_24 = arith.constant 0 : index
    %c0_25 = arith.constant 0 : index
    %33 = vector.load %arg9[%c0_24, %c0_25] : memref<1x64xf32, #tpu.memory_space<vmem>>, vector<1x64xf32>
    %34 = vector.broadcast %33 : vector<1x64xf32> to vector<8x64xf32>
    %35 = arith.addf %32, %34 : vector<8x64xf32>
    %cst_26 = arith.constant 0.000000e+00 : f32
    %36 = vector.broadcast %cst_26 : f32 to vector<8x64xf32>
    %37 = arith.cmpf ogt, %35, %36 : vector<8x64xf32>
    %cst_27 = arith.constant 1.000000e-01 : f32
    %38 = vector.broadcast %cst_27 : f32 to vector<8x64xf32>
    %39 = arith.mulf %38, %35 : vector<8x64xf32>
    %40 = arith.select %37, %35, %39 : vector<8x64xi1>, vector<8x64xf32>
    %c0_28 = arith.constant 0 : index
    %c0_29 = arith.constant 0 : index
    %41 = vector.load %arg10[%c0_28, %c0_29] : memref<8x64xf32, #tpu.memory_space<vmem>>, vector<8x64xf32>
    tpu.vector_store %arg10[%c0_28, %c0_29], %40 {strides = array<i32>} : memref<8x64xf32, #tpu.memory_space<vmem>>, vector<8x64xf32>,
    return
  }
  func.func @transform_0(%arg0: i32) -> (i32, i32) {
    %c0_i32 = arith.constant 0 : i32
    %c0_i32_0 = arith.constant 0 : i32
    return %arg0, %c0_i32 : i32, i32
  }
  func.func @transform_1(%arg0: i32) -> (i32, i32) {
    %c0_i32 = arith.constant 0 : i32
    %c0_i32_0 = arith.constant 0 : i32
    %c0_i32_1 = arith.constant 0 : i32
    return %c0_i32, %c0_i32_0 : i32, i32
  }
  func.func @transform_2(%arg0: i32) -> (i32, i32) {
    %c0_i32 = arith.constant 0 : i32
    %c0_i32_0 = arith.constant 0 : i32
    %c0_i32_1 = arith.constant 0 : i32
    return %c0_i32, %c0_i32_0 : i32, i32
  }
  func.func @transform_3(%arg0: i32) -> (i32, i32) {
    %c0_i32 = arith.constant 0 : i32
    %c0_i32_0 = arith.constant 0 : i32
    %c0_i32_1 = arith.constant 0 : i32
    return %c0_i32, %c0_i32_0 : i32, i32
  }
  func.func @transform_4(%arg0: i32) -> (i32, i32) {
    %c0_i32 = arith.constant 0 : i32
    %c0_i32_0 = arith.constant 0 : i32
    %c0_i32_1 = arith.constant 0 : i32
    return %c0_i32, %c0_i32_0 : i32, i32
  }
  func.func @transform_5(%arg0: i32) -> (i32, i32) {
    %c0_i32 = arith.constant 0 : i32
    %c0_i32_0 = arith.constant 0 : i32
    %c0_i32_1 = arith.constant 0 : i32
    return %c0_i32, %c0_i32_0 : i32, i32
  }
  func.func @transform_6(%arg0: i32) -> (i32, i32) {
    %c0_i32 = arith.constant 0 : i32
    %c0_i32_0 = arith.constant 0 : i32
    %c0_i32_1 = arith.constant 0 : i32
    return %c0_i32, %c0_i32_0 : i32, i32
  }
  func.func @transform_7(%arg0: i32) -> (i32, i32) {
    %c0_i32 = arith.constant 0 : i32
    %c0_i32_0 = arith.constant 0 : i32
    %c0_i32_1 = arith.constant 0 : i32
    return %c0_i32, %c0_i32_0 : i32, i32
  }
  func.func @transform_8(%arg0: i32) -> (i32, i32) {
    %c0_i32 = arith.constant 0 : i32
    %c0_i32_0 = arith.constant 0 : i32
    %c0_i32_1 = arith.constant 0 : i32
    return %c0_i32, %c0_i32_0 : i32, i32
  }
  func.func @transform_9(%arg0: i32) -> (i32, i32) {
    %c0_i32 = arith.constant 0 : i32
    %c0_i32_0 = arith.constant 0 : i32
    return %arg0, %c0_i32 : i32, i32
  }
}

</mosaic_0001>

<bundles_post_ra>
// kernel: wrench_encoder_forward.1
= control target key start
LH: loop header
LB: loop body
LE: loop exit
PB: predicated region body
PF: predicated region fallthrough
CT: control target
= control target key end

     0   :  { %14 = vsyncpa [#allocation3], 0  ;;  %s627_s30 = smov [#allocation2]   ;;  %s859_s0 = inlined_call_operand.vmem [shape: f32[8,6], index: 0, kind: input, shape index: {}]   ;;  %s860_s1 = inlined_call_operand.vmem [shape: f32[6,128], index: 1, kind: input, shape index: {}]   ;;  %s861_s2 = inlined_call_operand.vmem [shape: f32[1,128], index: 2, kind: input, shape index: {}]   ;;  %s862_s3 = inlined_call_operand.vmem [shape: f32[128,128], index: 3, kind: input, shape index: {}]   ;;  %s863_s4 = inlined_call_operand.vmem [shape: f32[1,128], index: 4, kind: input, shape index: {}]   ;;  %s864_s5 = inlined_call_operand.hbm [shape: f32[128,128], index: 5, kind: input, shape index: {}]   ;;  %s865_s6 = inlined_call_operand.vmem [shape: f32[1,128], index: 6, kind: input, shape index: {}]   ;;  %s866_s7 = inlined_call_operand.vmem [shape: f32[128,64], index: 7, kind: input, shape index: {}]   ;;  %s867_s8 = inlined_call_operand.vmem [shape: f32[1,64], index: 8, kind: input, shape index: {}]   ;;  %s868_s9 = inlined_call_operand.vmem [shape: f32[8,64], index: 9, kind: output, shape index: {}]  }
   0x1   :  { %s30_s10 = sshll.u32 %s627_s30, 4  ;;  %s31_s10 = int_to_ptr.vmem [resolvable:$true] %s30_s10 }
   0x2   :  { %s613_s11 = scalar_lea.vmem %s31_s10, 2048  ;;  %p618_p1 = scmp.lt.s32.totalorder %s31_s10, %s31_s10 }
   0x3   :  { %p614_p0 = scmp.ne.s32.totalorder %s31_s10, %s613_s11  ;;  %p619_p2 = scmp.lt.s32.totalorder %s613_s11, %s613_s11 }
   0x5   :  { %p620_p3 = por %p619_p2, %p618_p1 }
   0x7   :  { %p621_p4 = pnand %p620_p3, %p614_p0 }
   0x9   :  { %624 = shalt.err (!%p621_p4)
}
   0xa   :  { %s628_s12 = smov 128   ;;  %s629_s13 = smov 8  }
   0xb   :  { %36 = dma.hbm_to_vmem [thread:$0]  %s864_s5, 2048, %s31_s10, [#allocation3], %s628_s12, %s628_s12, %s629_s13  }
   0xc   :  { %625 = dma.done.wait [#allocation3], 2048  }
   0xd   :  { %626 = vsyncadd [#allocation3], 4294965248  ;;  %v630_v0 = vmov 0.0   ;;  %vm631_vm0 = vmmov 0   ;;  %vm59_vm1 = vcmask 1045504   ;;  %vm55_vm2 = vcmask 48128  }
   0xe   :  { %490 = vmatprep.subr.mxu0 %v630_v0  ;;  %492 = vmatprep.mubr.msk.f32.mxu0 %vm631_vm0, %v630_v0  ;;  %v47_v1 = vld [vmem:[%s860_s1] sm:$0x3f]  ;;  %v151_v3 = vld [vmem:[%s862_s3 + $0x78] sm:$0xff]  ;;  %v150_v4 = vld [vmem:[%s862_s3 + $0x70] sm:$0xff]  ;;  %vm424_vm7 = vcmask 523264  }
   0xf   :  { %495 = vmatprep.subr.mxu1 %v630_v0  ;;  %527 = vmatprep.mubr.msk.f32.mxu1 %vm631_vm0, %v630_v0  ;;  %v46_v2 = vld [vmem:[%s859_s0] sm:$0xff]  ;;  %v149_v5 = vld [vmem:[%s862_s3 + $0x68] sm:$0xff]  ;;  %v147_v7 = vld [vmem:[%s862_s3 + $0x58] sm:$0xff] }
  0x10   :  { %491 = vmatpush3.msk.msra.mxu0 %vm59_vm1, %v47_v1  ;;  %496 = vmatpush3.msra.mxu1 %v151_v3  ;;  %v148_v6 = vld [vmem:[%s862_s3 + $0x60] sm:$0xff]  ;;  %v146_v8 = vld [vmem:[%s862_s3 + $0x50] sm:$0xff]  ;;  %v145_v9 = vld [vmem:[%s862_s3 + $0x48] sm:$0xff] }
  0x11   :  { %493 = vmatmul.mubr.msk.f32.vlgmr.msra.gmra.mxu0 %vm55_vm2, %v46_v2  ;;  %497 = vmatprep.subr.mxu1 %v630_v0  ;;  %v144_v10 = vld [vmem:[%s862_s3 + $0x40] sm:$0xff]  ;;  %v143_v11 = vld [vmem:[%s862_s3 + $0x38] sm:$0xff]  ;;  %v142_v12 = vld [vmem:[%s862_s3 + $0x30] sm:$0xff] }
  0x12   :  { %498 = vmatpush3.msra.mxu1 %v150_v4  ;;  %530 = vmatprep.subr.mxu0 %v630_v0  ;;  %v141_v13 = vld [vmem:[%s862_s3 + $0x28] sm:$0xff]  ;;  %v140_v14 = vld [vmem:[%s862_s3 + $0x20] sm:$0xff]  ;;  %v139_v15 = vld [vmem:[%s862_s3 + $0x18] sm:$0xff] }
  0x13   :  { %499 = vmatprep.subr.mxu1 %v630_v0  ;;  %562 = vmatprep.mubr.msk.f32.mxu0 %vm631_vm0, %v630_v0  ;;  %v138_v16 = vld [vmem:[%s862_s3 + $0x10] sm:$0xff]  ;;  %v137_v17 = vld [vmem:[%s862_s3 + $0x8] sm:$0xff]  ;;  %v136_v18 = vld [vmem:[%s862_s3] sm:$0xff] }
  0x14   :  { %500 = vmatpush3.msra.mxu1 %v149_v5  ;;  %v247_v19 = vld [vmem:[#allocation2 + $0x78] sm:$0xff]  ;;  %v246_v20 = vld [vmem:[#allocation2 + $0x70] sm:$0xff]  ;;  %v245_v21 = vld [vmem:[#allocation2 + $0x68] sm:$0xff] }
  0x15   :  { %501 = vmatprep.subr.mxu1 %v630_v0  ;;  %531 = vmatpush3.msra.mxu0 %v247_v19  ;;  %v244_v22 = vld [vmem:[#allocation2 + $0x60] sm:$0xff]  ;;  %v243_v23 = vld [vmem:[#allocation2 + $0x58] sm:$0xff]  ;;  %v242_v24 = vld [vmem:[#allocation2 + $0x50] sm:$0xff] }
  0x16   :  { %502 = vmatpush3.msra.mxu1 %v148_v6  ;;  %532 = vmatprep.subr.mxu0 %v630_v0  ;;  %v241_v25 = vld [vmem:[#allocation2 + $0x48] sm:$0xff]  ;;  %v240_v26 = vld [vmem:[#allocation2 + $0x40] sm:$0xff]  ;;  %v239_v27 = vld [vmem:[#allocation2 + $0x38] sm:$0xff] }
  0x17   :  { %503 = vmatprep.subr.mxu1 %v630_v0  ;;  %533 = vmatpush3.msra.mxu0 %v246_v20  ;;  %v238_v28 = vld [vmem:[#allocation2 + $0x30] sm:$0xff]  ;;  %v237_v29 = vld [vmem:[#allocation2 + $0x28] sm:$0xff]  ;;  %v236_v30 = vld [vmem:[#allocation2 + $0x20] sm:$0xff] }
  0x18   :  { %504 = vmatpush3.msra.mxu1 %v147_v7  ;;  %534 = vmatprep.subr.mxu0 %v630_v0  ;;  %v235_v31 = vld [vmem:[#allocation2 + $0x18] sm:$0xff]  ;;  %v431_v32 = vld [vmem:[%s861_s2] ss:$0 sm:$0xff]  ;;  %v234_v38 = vld [vmem:[#allocation2 + $0x10] sm:$0xff] }
  0x19   :  { %505 = vmatprep.subr.mxu1 %v630_v0  ;;  %535 = vmatpush3.msra.mxu0 %v245_v21  ;;  %v233_v39 = vld [vmem:[#allocation2 + $0x8] sm:$0xff]  ;;  %v232_v40 = vld [vmem:[#allocation2] sm:$0xff]  ;;  %v343_v41 = vld [vmem:[%s866_s7 + $0x78] sm:$0xff] }
  0x1a   :  { %506 = vmatpush3.msra.mxu1 %v146_v8  ;;  %536 = vmatprep.subr.mxu0 %v630_v0  ;;  %v342_v42 = vld [vmem:[%s866_s7 + $0x70] sm:$0xff]  ;;  %v341_v43 = vld [vmem:[%s866_s7 + $0x68] sm:$0xff]  ;;  %v340_v44 = vld [vmem:[%s866_s7 + $0x60] sm:$0xff] }
  0x1b   :  { %507 = vmatprep.subr.mxu1 %v630_v0  ;;  %537 = vmatpush3.msra.mxu0 %v244_v22  ;;  %v339_v45 = vld [vmem:[%s866_s7 + $0x58] sm:$0xff]  ;;  %v338_v46 = vld [vmem:[%s866_s7 + $0x50] sm:$0xff]  ;;  %v337_v47 = vld [vmem:[%s866_s7 + $0x48] sm:$0xff] }
  0x1c   :  { %508 = vmatpush3.msra.mxu1 %v145_v9  ;;  %538 = vmatprep.subr.mxu0 %v630_v0  ;;  %v336_v48 = vld [vmem:[%s866_s7 + $0x40] sm:$0xff]  ;;  %v335_v49 = vld [vmem:[%s866_s7 + $0x38] sm:$0xff]  ;;  %v334_v50 = vld [vmem:[%s866_s7 + $0x30] sm:$0xff] }
  0x1d   :  { %509 = vmatprep.subr.mxu1 %v630_v0  ;;  %539 = vmatpush3.msra.mxu0 %v243_v23  ;;  %v333_v51 = vld [vmem:[%s866_s7 + $0x28] sm:$0xff]  ;;  %v332_v52 = vld [vmem:[%s866_s7 + $0x20] sm:$0xff]  ;;  %v331_v53 = vld [vmem:[%s866_s7 + $0x18] sm:$0xff] }
  0x1e   :  { %510 = vmatpush3.msra.mxu1 %v144_v10  ;;  %540 = vmatprep.subr.mxu0 %v630_v0  ;;  %v434_v54 = vld [vmem:[%s863_s4] ss:$0 sm:$0xff]  ;;  %v330_v60 = vld [vmem:[%s866_s7 + $0x10] sm:$0xff]  ;;  %v329_v61 = vld [vmem:[%s866_s7 + $0x8] sm:$0xff] }
  0x1f   :  { %511 = vmatprep.subr.mxu1 %v630_v0  ;;  %541 = vmatpush3.msra.mxu0 %v242_v24  ;;  %v328_v62 = vld [vmem:[%s866_s7] sm:$0xff] }
  0x20   :  { %512 = vmatpush3.msra.mxu1 %v143_v11  ;;  %542 = vmatprep.subr.mxu0 %v630_v0  ;;  %v435_v63 = vld [vmem:[%s865_s6] ss:$0 sm:$0xff] }
  0x21   :  { %513 = vmatprep.subr.mxu1 %v630_v0  ;;  %543 = vmatpush3.msra.mxu0 %v241_v25  ;;  %v436_v6 = vld [vmem:[%s867_s8] ss:$0 sm:$0xff] }
  0x22   :  { %514 = vmatpush3.msra.mxu1 %v142_v12  ;;  %544 = vmatprep.subr.mxu0 %v630_v0 }
  0x23   :  { %515 = vmatprep.subr.mxu1 %v630_v0  ;;  %545 = vmatpush3.msra.mxu0 %v240_v26 }
  0x24   :  { %516 = vmatpush3.msra.mxu1 %v141_v13  ;;  %546 = vmatprep.subr.mxu0 %v630_v0 }
  0x25   :  { %517 = vmatprep.subr.mxu1 %v630_v0  ;;  %547 = vmatpush3.msra.mxu0 %v239_v27 }
  0x26   :  { %518 = vmatpush3.msra.mxu1 %v140_v14  ;;  %548 = vmatprep.subr.mxu0 %v630_v0 }
  0x27   :  { %519 = vmatprep.subr.mxu1 %v630_v0  ;;  %549 = vmatpush3.msra.mxu0 %v238_v28 }
  0x28   :  { %520 = vmatpush3.msra.mxu1 %v139_v15  ;;  %550 = vmatprep.subr.mxu0 %v630_v0 }
  0x29   :  { %521 = vmatprep.subr.mxu1 %v630_v0  ;;  %551 = vmatpush3.msra.mxu0 %v237_v29 }
  0x2a   :  { %522 = vmatpush3.msra.mxu1 %v138_v16  ;;  %552 = vmatprep.subr.mxu0 %v630_v0 }
  0x2b   :  { %523 = vmatprep.subr.mxu1 %v630_v0  ;;  %553 = vmatpush3.msra.mxu0 %v236_v30 }
  0x2c   :  { %524 = vmatpush3.msra.mxu1 %v137_v17  ;;  %554 = vmatprep.subr.mxu0 %v630_v0 }
  0x2d   :  { %525 = vmatprep.subr.mxu1 %v630_v0  ;;  %555 = vmatpush3.msra.mxu0 %v235_v31 }
  0x2e   :  { %526 = vmatpush3.msra.mxu1 %v136_v18  ;;  %556 = vmatprep.subr.mxu0 %v630_v0 }
  0x2f   :  { %565 = vmatprep.subr.mxu1 %v630_v0  ;;  %557 = vmatpush3.msra.mxu0 %v234_v38 }
  0x30   :  { %558 = vmatprep.subr.mxu0 %v630_v0 }
  0x31   :  { %559 = vmatpush3.msra.mxu0 %v233_v39 }
  0x32   :  { %560 = vmatprep.subr.mxu0 %v630_v0 }
  0x33   :  { %561 = vmatpush3.msra.mxu0 %v232_v40 }
  0xd1   :  { %v129_v33 = vpop.f32.mrf.mxu0 }
  0xd2   :  { %v130_v34 = vadd.f32 %v431_v32, %v129_v33 }
  0xd3   :  { %v494_v35 = vpop.f32.mrf.mxu0 }
  0xd4   :  { %v134_v36 = vmul.f32 0.1, %v130_v34  ;;  %vm133_vm3 = vcmp.gt.f32.partialorder %v130_v34, 0.0 }
  0xd6   :  { %v135_v37 = vsel %vm133_vm3, %v130_v34, %v134_v36 }
  0xd7   :  { %528 = vmatmul.mubr.f32.vlgmr.msra.gmra.mxu1 %v135_v37 }
  0xd8   :  { %597 = vmatprep.mubr.msk.f32.mxu1 %vm631_vm0, %v630_v0  ;;  %566 = vmatpush3.msra.mxu1 %v343_v41 }
  0xd9   :  { %567 = vmatprep.subr.mxu1 %v630_v0 }
  0xda   :  { %568 = vmatpush3.msra.mxu1 %v342_v42 }
  0xdb   :  { %569 = vmatprep.subr.mxu1 %v630_v0 }
  0xdc   :  { %570 = vmatpush3.msra.mxu1 %v341_v43 }
  0xdd   :  { %571 = vmatprep.subr.mxu1 %v630_v0 }
  0xde   :  { %572 = vmatpush3.msra.mxu1 %v340_v44 }
  0xdf   :  { %573 = vmatprep.subr.mxu1 %v630_v0 }
  0xe0   :  { %574 = vmatpush3.msra.mxu1 %v339_v45 }
  0xe1   :  { %575 = vmatprep.subr.mxu1 %v630_v0 }
  0xe2   :  { %576 = vmatpush3.msra.mxu1 %v338_v46 }
  0xe3   :  { %577 = vmatprep.subr.mxu1 %v630_v0 }
  0xe4   :  { %578 = vmatpush3.msra.mxu1 %v337_v47 }
  0xe5   :  { %579 = vmatprep.subr.mxu1 %v630_v0 }
  0xe6   :  { %580 = vmatpush3.msra.mxu1 %v336_v48 }
  0xe7   :  { %581 = vmatprep.subr.mxu1 %v630_v0 }
  0xe8   :  { %582 = vmatpush3.msra.mxu1 %v335_v49 }
  0xe9   :  { %583 = vmatprep.subr.mxu1 %v630_v0 }
  0xea   :  { %584 = vmatpush3.msra.mxu1 %v334_v50 }
  0xeb   :  { %585 = vmatprep.subr.mxu1 %v630_v0 }
  0xec   :  { %586 = vmatpush3.msra.mxu1 %v333_v51 }
  0xed   :  { %587 = vmatprep.subr.mxu1 %v630_v0 }
  0xee   :  { %588 = vmatpush3.msra.mxu1 %v332_v52 }
  0xef   :  { %589 = vmatprep.subr.mxu1 %v630_v0 }
  0xf0   :  { %590 = vmatpush3.msra.mxu1 %v331_v53 }
  0xf1   :  { %591 = vmatprep.subr.mxu1 %v630_v0 }
  0xf2   :  { %592 = vmatpush3.msra.mxu1 %v330_v60 }
  0xf3   :  { %593 = vmatprep.subr.mxu1 %v630_v0 }
  0xf4   :  { %594 = vmatpush3.msra.mxu1 %v329_v61 }
  0xf5   :  { %595 = vmatprep.subr.mxu1 %v630_v0 }
  0xf6   :  { %596 = vmatpush3.msra.mxu1 %v328_v62 }
 0x197   :  { %v225_v55 = vpop.f32.mrf.mxu1 }
 0x198   :  { %v226_v56 = vadd.f32 %v434_v54, %v225_v55 }
 0x199   :  { %v529_v57 = vpop.f32.mrf.mxu1 }
 0x19a   :  { %vm229_vm4 = vcmp.gt.f32.partialorder %v226_v56, 0.0  ;;  %v230_v58 = vmul.f32 0.1, %v226_v56 }
 0x19c   :  { %v231_v59 = vsel %vm229_vm4, %v226_v56, %v230_v58 }
 0x19d   :  { %563 = vmatmul.mubr.f32.vlgmr.msra.gmra.mxu0 %v231_v59 }
 0x25d   :  { %v321_v1 = vpop.f32.mrf.mxu0 }
 0x25e   :  { %v322_v2 = vadd.f32 %v435_v63, %v321_v1 }
 0x25f   :  { %v564_v3 = vpop.f32.mrf.mxu0 }
 0x260   :  { %vm325_vm5 = vcmp.gt.f32.partialorder %v322_v2, 0.0  ;;  %v326_v4 = vmul.f32 0.1, %v322_v2 }
 0x262   :  { %v327_v5 = vsel %vm325_vm5, %v322_v2, %v326_v4 }
 0x263   :  { %598 = vmatmul.mubr.f32.vlgmr.msra.gmra.mxu1 %v327_v5 }
 0x323   :  { %v417_v7 = vpop.f32.mrf.mxu1 }
 0x324   :  { %v418_v8 = vadd.f32 %v436_v6, %v417_v7 }
 0x325   :  { %v599_v9 = vpop.f32.mrf.mxu1 }
 0x326   :  { %vm421_vm6 = vcmp.gt.f32.partialorder %v418_v8, 0.0  ;;  %v422_v0 = vmul.f32 0.1, %v418_v8 }
 0x328   :  { %v423_v10 = vsel %vm421_vm6, %v418_v8, %v422_v0 }
 0x329   :  { %425 = vst.msk [vmem:[%s868_s9] sm:$0xff] %vm424_vm7, %v423_v10 }
 0x32a   :  { %430 = vsyncpa [#allocation3], 1 }

</bundles_post_ra>
